<compile_context>
chip_gen: v7x
topology: tpu7x:2x2x1
jax: 0.10.0
libtpu: 0.0.40
codegen_flags: <defaults>
</compile_context>

<pallas_src>
import functools
import math

import jax
import jax.numpy as jnp
from jax.experimental import pallas as pl
from jax.experimental.pallas import tpu as pltpu


# ----------------------------------------------------------------------------
# Fused Pallas kernel: whole MLP for one batch tile
# ----------------------------------------------------------------------------
def _ffn_fused_kernel(x_ref, w_in_ref, b_in_ref, *rest,
                      num_hidden: int, lane_dense_out: bool):
    if num_hidden > 0:
        w_hid_ref, b_hid_ref, w_out_ref, b_out_ref, o_ref = rest
    else:
        w_out_ref, b_out_ref, o_ref = rest

    cdt = w_in_ref.dtype  # bf16 compute dtype fed to the MXU

    # Layer 0: Linear(data_dim -> hidden) + Sigmoid  (bf16 MXU, f32 accumulate)
    h = jnp.dot(x_ref[...], w_in_ref[...], preferred_element_type=jnp.float32)
    h = jax.nn.sigmoid(h + b_in_ref[...])

    # Hidden layers: Linear(hidden -> hidden) + ReLU (statically unrolled).
    # TODO(synk): for very large (L-1)*H*H stacks (v7x 64 MiB VMEM) stream w_hid
    # from HBM (memory_space=pl.ANY + double-buffered pltpu.make_async_copy)
    # instead of keeping the whole stack resident.
    for l in range(num_hidden):
        h = jnp.dot(h.astype(cdt), w_hid_ref[l],
                    preferred_element_type=jnp.float32)
        h = jnp.maximum(h + b_hid_ref[l], 0.0)

    # Output layer: Linear(hidden -> out_dim) + Sigmoid
    y = jnp.dot(h.astype(cdt), w_out_ref[...],
                preferred_element_type=jnp.float32)
    y = jax.nn.sigmoid(y + b_out_ref[...])

    if lane_dense_out:
        # (tb, 1) -> (1, tb): unmasked, lane-dense store/writeback.
        o_ref[...] = y.reshape(o_ref.shape).astype(o_ref.dtype)
    else:
        o_ref[...] = y.astype(o_ref.dtype)


def _round_up(a: int, m: int) -> int:
    return (a + m - 1) // m * m


def ffnetwork_forward(params, x, *, batch_tile: int = 1024):
    """Fused forward pass: a single pallas_call over batch tiles."""
    w_in, b_in = params["w_in"], params["b_in"]
    w_hid, b_hid = params["w_hid"], params["b_hid"]
    w_out, b_out = params["w_out"], params["b_out"]

    B, Din = x.shape
    H = w_in.shape[1]
    Dout = w_out.shape[1]
    num_hidden = 0 if w_hid is None else w_hid.shape[0]

    # ---- Pad feature dims to 128-lane multiples (mathematically exact). ----
    LANE = 128
    Din_p = _round_up(Din, LANE)
    H_p = _round_up(H, LANE)

    if Din_p != Din:
        x = jnp.pad(x, ((0, 0), (0, Din_p - Din)))
        w_in = jnp.pad(w_in, ((0, Din_p - Din), (0, 0)))
    if H_p != H:
        w_in = jnp.pad(w_in, ((0, 0), (0, H_p - H)))
        b_in = jnp.pad(b_in, (0, H_p - H))
        if num_hidden > 0:
            w_hid = jnp.pad(w_hid, ((0, 0), (0, H_p - H), (0, H_p - H)))
            b_hid = jnp.pad(b_hid, ((0, 0), (0, H_p - H)))
        w_out = jnp.pad(w_out, ((0, H_p - H), (0, 0)))

    # ---- bf16 into the MXU; biases (added post-accumulation) stay f32. ----
    cdt = jnp.bfloat16
    x = x.astype(cdt)
    w_in = w_in.astype(cdt)
    w_out = w_out.astype(cdt)
    b_in = b_in.astype(jnp.float32).reshape(1, H_p)
    b_out = b_out.astype(jnp.float32).reshape(1, Dout)
    if num_hidden > 0:
        w_hid = w_hid.astype(cdt)
        b_hid = b_hid.astype(jnp.float32).reshape(num_hidden, 1, H_p)

    # ---- Batch tile selection (multiple of 8, megacore + VMEM aware). ----
    if B <= batch_tile:
        tb = _round_up(B, 8)
        if B >= 512:                      # give the 2nd v7x TensorCore a tile
            tb = _round_up(pl.cdiv(B, 2), 8)
    else:
        tb = batch_tile

    weight_arrays = [w_in, b_in, w_out, b_out]
    if num_hidden > 0:
        weight_arrays += [w_hid, b_hid]
    weight_bytes = sum(int(a.size) * a.dtype.itemsize for a in weight_arrays)

    try:
        vmem_cap = int(pltpu.get_tpu_info().vmem_capacity_bytes)
    except Exception:
        vmem_cap = 64 * 1024 * 1024       # v7x has the smallest per-TC VMEM
    budget = int(vmem_cap * 0.85)

    def _tile_bytes(t):
        x_b = 2 * t * Din_p * 2                   # double-buffered bf16 input tile
        o_b = 2 * t * max(Dout, 1) * 4            # double-buffered f32 output tile
        a_b = 3 * t * H_p * 4                     # f32 activation temporaries
        return x_b + o_b + a_b

    # Conservative: count weight buffers twice (covers the fallback build).
    while tb > 8 and 2 * weight_bytes + _tile_bytes(tb) > budget:
        tb = max(8, _round_up(tb // 2, 8))

    Bp = _round_up(B, tb)
    if Bp != B:
        x = jnp.pad(x, ((0, Bp - B), (0, 0)))     # padded rows discarded at the end
    n_tiles = Bp // tb

    est = 2 * weight_bytes + _tile_bytes(tb)
    compiler_kwargs = dict(dimension_semantics=("parallel",))
    if est > 32 * 1024 * 1024:
        compiler_kwargs["vmem_limit_bytes"] = min(
            max(int(est * 1.25), est + (1 << 20)), budget)

    inputs = [x, w_in, b_in]
    if num_hidden > 0:
        inputs += [w_hid, b_hid]
    inputs += [w_out, b_out]

    def _build(optimized: bool):
        lane_dense_out = optimized and (Dout == 1)
        wmode = dict(pipeline_mode=pl.Buffered(1)) if optimized else {}

        in_specs = [
            pl.BlockSpec((tb, Din_p), lambda i: (i, 0)),              # streamed tile
            pl.BlockSpec((Din_p, H_p), lambda i: (0, 0), **wmode),    # resident W_in
            pl.BlockSpec((1, H_p), lambda i: (0, 0), **wmode),
        ]
        if num_hidden > 0:
            in_specs += [
                pl.BlockSpec((num_hidden, H_p, H_p), lambda i: (0, 0, 0), **wmode),
                pl.BlockSpec((num_hidden, 1, H_p), lambda i: (0, 0, 0), **wmode),
            ]
        in_specs += [
            pl.BlockSpec((H_p, Dout), lambda i: (0, 0), **wmode),
            pl.BlockSpec((1, Dout), lambda i: (0, 0), **wmode),
        ]

        if lane_dense_out:
            out_shape = jax.ShapeDtypeStruct((n_tiles, tb), jnp.float32)
            out_specs = pl.BlockSpec((1, tb), lambda i: (i, 0))
        else:
            out_shape = jax.ShapeDtypeStruct((Bp, Dout), jnp.float32)
            out_specs = pl.BlockSpec((tb, Dout), lambda i: (i, 0))

        call = pl.pallas_call(
            functools.partial(_ffn_fused_kernel, num_hidden=num_hidden,
                              lane_dense_out=lane_dense_out),
            out_shape=out_shape,
            grid=(n_tiles,),
            in_specs=in_specs,
            out_specs=out_specs,
            compiler_params=pltpu.CompilerParams(**compiler_kwargs),
        )
        return call, lane_dense_out

    out = None
    lane_dense_out = False
    for optimized in (True, False):
        try:
            call, lane_dense_out = _build(optimized)
            out = jax.block_until_ready(call(*inputs))
            break
        except Exception:
            if not optimized:
                raise

    if lane_dense_out:
        out = out.reshape(Bp, 1)
    return out[:B]


# ----------------------------------------------------------------------------
# Deterministic parameter init (matches torch init: xavier_uniform W, zero b)
# ----------------------------------------------------------------------------
def _xavier_uniform(key, fan_in, fan_out, dtype=jnp.float32):
    bound = math.sqrt(6.0 / (fan_in + fan_out))
    return jax.random.uniform(
        key, (fan_in, fan_out), dtype=dtype, minval=-bound, maxval=bound)


def make_ffnetwork_params(key, data_dim, hidden_dim, out_dim=1, num_layers=1,
                          dtype=jnp.float32):
    assert data_dim > 0 and hidden_dim > 0 and num_layers > 0
    num_hidden = num_layers - 1
    keys = jax.random.split(key, num_layers + 1)

    w_in = _xavier_uniform(keys[0], data_dim, hidden_dim, dtype)
    b_in = jnp.zeros((hidden_dim,), dtype)
    if num_hidden > 0:
        w_hid = jnp.stack(
            [_xavier_uniform(keys[1 + i], hidden_dim, hidden_dim, dtype)
             for i in range(num_hidden)])
        b_hid = jnp.zeros((num_hidden, hidden_dim), dtype)
    else:
        w_hid, b_hid = None, None
    w_out = _xavier_uniform(keys[-1], hidden_dim, out_dim, dtype)
    b_out = jnp.zeros((out_dim,), dtype)
    return dict(w_in=w_in, b_in=b_in, w_hid=w_hid, b_hid=b_hid,
                w_out=w_out, b_out=b_out)


# ----------------------------------------------------------------------------
# Plain-JAX (f32) reference for correctness check
# ----------------------------------------------------------------------------
def ffnetwork_forward_ref(params, x):
    h = jax.nn.sigmoid(x @ params["w_in"] + params["b_in"])
    if params["w_hid"] is not None:
        for l in range(params["w_hid"].shape[0]):
            h = jnp.maximum(h @ params["w_hid"][l] + params["b_hid"][l], 0.0)
    return jax.nn.sigmoid(h @ params["w_out"] + params["b_out"])


if __name__ == "__main__":
    key = jax.random.PRNGKey(0)
    k1, k2, k3, kx1, kx2, kx3 = jax.random.split(key, 6)

    # bf16 matmuls (f32 accumulation) vs f32 reference -> loosened tolerance.
    ATOL = RTOL = 2e-2

    # Case 1: multiple layers (fused hidden-layer loop) + non-aligned dims.
    batch, data_dim, hidden_dim, out_dim, num_layers = 8, 16, 32, 1, 3
    params = make_ffnetwork_params(k1, data_dim, hidden_dim,
                                   out_dim=out_dim, num_layers=num_layers)
    x = jax.random.normal(kx1, (batch, data_dim), dtype=jnp.float32)
    y = jax.block_until_ready(ffnetwork_forward(params, x))
    y_ref = ffnetwork_forward_ref(params, x)
    assert y.shape == (batch, out_dim), y.shape
    assert jnp.allclose(y, y_ref, atol=ATOL, rtol=RTOL), float(
        jnp.max(jnp.abs(y - y_ref)))

    # Case 2: single layer + batch not a multiple of 8 (padding path).
    params2 = make_ffnetwork_params(k2, data_dim, hidden_dim,
                                    out_dim=1, num_layers=1)
    x2 = jax.random.normal(kx2, (5, data_dim), dtype=jnp.float32)
    y2 = jax.block_until_ready(ffnetwork_forward(params2, x2))
    y2_ref = ffnetwork_forward_ref(params2, x2)
    assert y2.shape == (5, 1), y2.shape
    assert jnp.allclose(y2, y2_ref, atol=ATOL, rtol=RTOL), float(
        jnp.max(jnp.abs(y2 - y2_ref)))

    # Case 3: out_dim > 1 (non-lane-dense output path).
    params3 = make_ffnetwork_params(k3, data_dim, hidden_dim,
                                    out_dim=4, num_layers=2)
    x3 = jax.random.normal(kx3, (12, data_dim), dtype=jnp.float32)
    y3 = jax.block_until_ready(ffnetwork_forward(params3, x3))
    y3_ref = ffnetwork_forward_ref(params3, x3)
    assert y3.shape == (12, 4), y3.shape
    assert jnp.allclose(y3, y3_ref, atol=ATOL, rtol=RTOL), float(
        jnp.max(jnp.abs(y3 - y3_ref)))

    print("KERNEL_OK")
</pallas_src>

<mosaic_0001>
module attributes {stable_mosaic.version = 11 : i64} {
  func.func @_ffn_fused_kernel(%arg0: i32, %arg1: memref<8x128xbf16, #tpu.memory_space<vmem>>, %arg2: memref<128x128xbf16, #tpu.memory_space<vmem>>, %arg3: memref<1x128xf32, #tpu.memory_space<vmem>>, %arg4: memref<2x128x128xbf16, #tpu.memory_space<vmem>>, %arg5: memref<2x1x128xf32, #tpu.memory_space<vmem>>, %arg6: memref<128x1xbf16, #tpu.memory_space<vmem>>, %arg7: memref<1x1xf32, #tpu.memory_space<vmem>>, %arg8: memref<1x8xf32, #tpu.memory_space<vmem>>) attributes {dimension_semantics = [#tpu.dimension_semantics<parallel>], iteration_bounds = array<i64: 1>, scalar_prefetch = 0 : i64, scratch_operands = 0 : i64, tpu.core_type = #tpu.core_type<tc>, window_params = [{transform_indices = @transform_0, window_bounds = array<i64: 8, 128>}, {pipeline_mode = #tpu.pipeline_mode<synchronous>, transform_indices = @transform_1, window_bounds = array<i64: 128, 128>}, {pipeline_mode = #tpu.pipeline_mode<synchronous>, transform_indices = @transform_2, window_bounds = array<i64: 1, 128>}, {pipeline_mode = #tpu.pipeline_mode<synchronous>, transform_indices = @transform_3, window_bounds = array<i64: 2, 128, 128>}, {pipeline_mode = #tpu.pipeline_mode<synchronous>, transform_indices = @transform_4, window_bounds = array<i64: 2, 1, 128>}, {pipeline_mode = #tpu.pipeline_mode<synchronous>, transform_indices = @transform_5, window_bounds = array<i64: 128, 1>}, {pipeline_mode = #tpu.pipeline_mode<synchronous>, transform_indices = @transform_6, window_bounds = array<i64: 1, 1>}, {transform_indices = @transform_7, window_bounds = array<i64: 1, 8>}]} {
    %c0 = arith.constant 0 : index
    %c0_0 = arith.constant 0 : index
    %0 = vector.load %arg1[%c0, %c0_0] : memref<8x128xbf16, #tpu.memory_space<vmem>>, vector<8x128xbf16>
    %c0_1 = arith.constant 0 : index
    %c0_2 = arith.constant 0 : index
    %1 = vector.load %arg2[%c0_1, %c0_2] : memref<128x128xbf16, #tpu.memory_space<vmem>>, vector<128x128xbf16>
    %cst = arith.constant dense<0.000000e+00> : vector<8x128xf32>
    %2 = tpu.matmul %0, %1, %cst {dimension_numbers = #tpu.dot_dimension_numbers<[1], [0], [0], [1], [0, 0, 1, 1], [], []>} : vector<8x128xbf16>, vector<128x128xbf16>, vector<8x128xf32> -> vector<8x128xf32>
    %c0_3 = arith.constant 0 : index
    %c0_4 = arith.constant 0 : index
    %3 = vector.load %arg3[%c0_3, %c0_4] : memref<1x128xf32, #tpu.memory_space<vmem>>, vector<1x128xf32>
    %4 = vector.broadcast %3 : vector<1x128xf32> to vector<8x128xf32>
    %5 = arith.addf %2, %4 : vector<8x128xf32>
    %6 = arith.negf %5 : vector<8x128xf32>
    %7 = math.exp %6 : vector<8x128xf32>
    %cst_5 = arith.constant 1.000000e+00 : f32
    %8 = vector.broadcast %cst_5 : f32 to vector<8x128xf32>
    %9 = arith.addf %8, %7 : vector<8x128xf32>
    %10 = arith.divf %8, %9 : vector<8x128xf32>
    %11 = arith.truncf %10 : vector<8x128xf32> to vector<8x128xbf16>
    %c0_6 = arith.constant 0 : index
    %c0_7 = arith.constant 0 : index
    %c0_8 = arith.constant 0 : index
    %12 = vector.load %arg4[%c0_6, %c0_7, %c0_8] : memref<2x128x128xbf16, #tpu.memory_space<vmem>>, vector<1x128x128xbf16>
    %13 = vector.shape_cast %12 : vector<1x128x128xbf16> to vector<128x128xbf16>
    %cst_9 = arith.constant dense<0.000000e+00> : vector<8x128xf32>
    %14 = tpu.matmul %11, %13, %cst_9 {dimension_numbers = #tpu.dot_dimension_numbers<[1], [0], [0], [1], [0, 0, 1, 1], [], []>} : vector<8x128xbf16>, vector<128x128xbf16>, vector<8x128xf32> -> vector<8x128xf32>
    %c0_10 = arith.constant 0 : index
    %c0_11 = arith.constant 0 : index
    %c0_12 = arith.constant 0 : index
    %15 = vector.load %arg5[%c0_10, %c0_11, %c0_12] : memref<2x1x128xf32, #tpu.memory_space<vmem>>, vector<1x1x128xf32>
    %16 = vector.shape_cast %15 : vector<1x1x128xf32> to vector<1x128xf32>
    %17 = vector.broadcast %16 : vector<1x128xf32> to vector<8x128xf32>
    %18 = arith.addf %14, %17 : vector<8x128xf32>
    %cst_13 = arith.constant 0.000000e+00 : f32
    %19 = vector.broadcast %cst_13 : f32 to vector<8x128xf32>
    %20 = arith.maximumf %18, %19 : vector<8x128xf32>
    %21 = arith.truncf %20 : vector<8x128xf32> to vector<8x128xbf16>
    %c1 = arith.constant 1 : index
    %c0_14 = arith.constant 0 : index
    %c0_15 = arith.constant 0 : index
    %22 = vector.load %arg4[%c1, %c0_14, %c0_15] : memref<2x128x128xbf16, #tpu.memory_space<vmem>>, vector<1x128x128xbf16>
    %23 = vector.shape_cast %22 : vector<1x128x128xbf16> to vector<128x128xbf16>
    %cst_16 = arith.constant dense<0.000000e+00> : vector<8x128xf32>
    %24 = tpu.matmul %21, %23, %cst_16 {dimension_numbers = #tpu.dot_dimension_numbers<[1], [0], [0], [1], [0, 0, 1, 1], [], []>} : vector<8x128xbf16>, vector<128x128xbf16>, vector<8x128xf32> -> vector<8x128xf32>
    %c1_17 = arith.constant 1 : index
    %c0_18 = arith.constant 0 : index
    %c0_19 = arith.constant 0 : index
    %25 = vector.load %arg5[%c1_17, %c0_18, %c0_19] : memref<2x1x128xf32, #tpu.memory_space<vmem>>, vector<1x1x128xf32>
    %26 = vector.shape_cast %25 : vector<1x1x128xf32> to vector<1x128xf32>
    %27 = vector.broadcast %26 : vector<1x128xf32> to vector<8x128xf32>
    %28 = arith.addf %24, %27 : vector<8x128xf32>
    %cst_20 = arith.constant 0.000000e+00 : f32
    %29 = vector.broadcast %cst_20 : f32 to vector<8x128xf32>
    %30 = arith.maximumf %28, %29 : vector<8x128xf32>
    %31 = arith.truncf %30 : vector<8x128xf32> to vector<8x128xbf16>
    %c0_21 = arith.constant 0 : index
    %c0_22 = arith.constant 0 : index
    %32 = vector.load %arg6[%c0_21, %c0_22] : memref<128x1xbf16, #tpu.memory_space<vmem>>, vector<128x1xbf16>
    %cst_23 = arith.constant dense<0.000000e+00> : vector<8x1xf32>
    %33 = tpu.matmul %31, %32, %cst_23 {dimension_numbers = #tpu.dot_dimension_numbers<[1], [0], [0], [1], [0, 0, 1, 1], [], []>} : vector<8x128xbf16>, vector<128x1xbf16>, vector<8x1xf32> -> vector<8x1xf32>
    %c0_24 = arith.constant 0 : index
    %c0_25 = arith.constant 0 : index
    %34 = vector.load %arg7[%c0_24, %c0_25] : memref<1x1xf32, #tpu.memory_space<vmem>>, vector<1x1xf32>
    %35 = vector.broadcast %34 : vector<1x1xf32> to vector<8x1xf32>
    %36 = arith.addf %33, %35 : vector<8x1xf32>
    %37 = arith.negf %36 : vector<8x1xf32>
    %38 = math.exp %37 : vector<8x1xf32>
    %cst_26 = arith.constant 1.000000e+00 : f32
    %39 = vector.broadcast %cst_26 : f32 to vector<8x1xf32>
    %40 = arith.addf %39, %38 : vector<8x1xf32>
    %41 = arith.divf %39, %40 : vector<8x1xf32>
    %42 = vector.shape_cast %41 : vector<8x1xf32> to vector<1x8xf32>
    %c0_27 = arith.constant 0 : index
    %c0_28 = arith.constant 0 : index
    %43 = vector.load %arg8[%c0_27, %c0_28] : memref<1x8xf32, #tpu.memory_space<vmem>>, vector<1x8xf32>
    tpu.vector_store %arg8[%c0_27, %c0_28], %42 {strides = array<i32>} : memref<1x8xf32, #tpu.memory_space<vmem>>, vector<1x8xf32>,
    return
  }
  func.func @transform_0(%arg0: i32) -> (i32, i32) {
    %c0_i32 = arith.constant 0 : i32
    %c0_i32_0 = arith.constant 0 : i32
    return %arg0, %c0_i32 : i32, i32
  }
  func.func @transform_1(%arg0: i32) -> (i32, i32) {
    %c0_i32 = arith.constant 0 : i32
    %c0_i32_0 = arith.constant 0 : i32
    %c0_i32_1 = arith.constant 0 : i32
    return %c0_i32, %c0_i32_0 : i32, i32
  }
  func.func @transform_2(%arg0: i32) -> (i32, i32) {
    %c0_i32 = arith.constant 0 : i32
    %c0_i32_0 = arith.constant 0 : i32
    %c0_i32_1 = arith.constant 0 : i32
    return %c0_i32, %c0_i32_0 : i32, i32
  }
  func.func @transform_3(%arg0: i32) -> (i32, i32, i32) {
    %c0_i32 = arith.constant 0 : i32
    %c0_i32_0 = arith.constant 0 : i32
    %c0_i32_1 = arith.constant 0 : i32
    %c0_i32_2 = arith.constant 0 : i32
    return %c0_i32, %c0_i32_0, %c0_i32_1 : i32, i32, i32
  }
  func.func @transform_4(%arg0: i32) -> (i32, i32, i32) {
    %c0_i32 = arith.constant 0 : i32
    %c0_i32_0 = arith.constant 0 : i32
    %c0_i32_1 = arith.constant 0 : i32
    %c0_i32_2 = arith.constant 0 : i32
    return %c0_i32, %c0_i32_0, %c0_i32_1 : i32, i32, i32
  }
  func.func @transform_5(%arg0: i32) -> (i32, i32) {
    %c0_i32 = arith.constant 0 : i32
    %c0_i32_0 = arith.constant 0 : i32
    %c0_i32_1 = arith.constant 0 : i32
    return %c0_i32, %c0_i32_0 : i32, i32
  }
  func.func @transform_6(%arg0: i32) -> (i32, i32) {
    %c0_i32 = arith.constant 0 : i32
    %c0_i32_0 = arith.constant 0 : i32
    %c0_i32_1 = arith.constant 0 : i32
    return %c0_i32, %c0_i32_0 : i32, i32
  }
  func.func @transform_7(%arg0: i32) -> (i32, i32) {
    %c0_i32 = arith.constant 0 : i32
    %c0_i32_0 = arith.constant 0 : i32
    return %arg0, %c0_i32 : i32, i32
  }
}

module attributes {stable_mosaic.version = 11 : i64} {
  func.func @_ffn_fused_kernel(%arg0: i32, %arg1: memref<8x128xbf16, #tpu.memory_space<vmem>>, %arg2: memref<128x128xbf16, #tpu.memory_space<vmem>>, %arg3: memref<1x128xf32, #tpu.memory_space<vmem>>, %arg4: memref<2x128x128xbf16, #tpu.memory_space<vmem>>, %arg5: memref<2x1x128xf32, #tpu.memory_space<vmem>>, %arg6: memref<128x1xbf16, #tpu.memory_space<vmem>>, %arg7: memref<1x1xf32, #tpu.memory_space<vmem>>, %arg8: memref<8x1xf32, #tpu.memory_space<vmem>>) attributes {dimension_semantics = [#tpu.dimension_semantics<parallel>], iteration_bounds = array<i64: 1>, scalar_prefetch = 0 : i64, scratch_operands = 0 : i64, tpu.core_type = #tpu.core_type<tc>, window_params = [{transform_indices = @transform_0, window_bounds = array<i64: 8, 128>}, {pipeline_mode = #tpu.pipeline_mode<synchronous>, transform_indices = @transform_1, window_bounds = array<i64: 128, 128>}, {pipeline_mode = #tpu.pipeline_mode<synchronous>, transform_indices = @transform_2, window_bounds = array<i64: 1, 128>}, {pipeline_mode = #tpu.pipeline_mode<synchronous>, transform_indices = @transform_3, window_bounds = array<i64: 2, 128, 128>}, {pipeline_mode = #tpu.pipeline_mode<synchronous>, transform_indices = @transform_4, window_bounds = array<i64: 2, 1, 128>}, {pipeline_mode = #tpu.pipeline_mode<synchronous>, transform_indices = @transform_5, window_bounds = array<i64: 128, 1>}, {pipeline_mode = #tpu.pipeline_mode<synchronous>, transform_indices = @transform_6, window_bounds = array<i64: 1, 1>}, {transform_indices = @transform_7, window_bounds = array<i64: 8, 1>}]} {
    %c0 = arith.constant 0 : index
    %c0_0 = arith.constant 0 : index
    %0 = vector.load %arg1[%c0, %c0_0] : memref<8x128xbf16, #tpu.memory_space<vmem>>, vector<8x128xbf16>
    %c0_1 = arith.constant 0 : index
    %c0_2 = arith.constant 0 : index
    %1 = vector.load %arg2[%c0_1, %c0_2] : memref<128x128xbf16, #tpu.memory_space<vmem>>, vector<128x128xbf16>
    %cst = arith.constant dense<0.000000e+00> : vector<8x128xf32>
    %2 = tpu.matmul %0, %1, %cst {dimension_numbers = #tpu.dot_dimension_numbers<[1], [0], [0], [1], [0, 0, 1, 1], [], []>} : vector<8x128xbf16>, vector<128x128xbf16>, vector<8x128xf32> -> vector<8x128xf32>
    %c0_3 = arith.constant 0 : index
    %c0_4 = arith.constant 0 : index
    %3 = vector.load %arg3[%c0_3, %c0_4] : memref<1x128xf32, #tpu.memory_space<vmem>>, vector<1x128xf32>
    %4 = vector.broadcast %3 : vector<1x128xf32> to vector<8x128xf32>
    %5 = arith.addf %2, %4 : vector<8x128xf32>
    %6 = arith.negf %5 : vector<8x128xf32>
    %7 = math.exp %6 : vector<8x128xf32>
    %cst_5 = arith.constant 1.000000e+00 : f32
    %8 = vector.broadcast %cst_5 : f32 to vector<8x128xf32>
    %9 = arith.addf %8, %7 : vector<8x128xf32>
    %10 = arith.divf %8, %9 : vector<8x128xf32>
    %11 = arith.truncf %10 : vector<8x128xf32> to vector<8x128xbf16>
    %c0_6 = arith.constant 0 : index
    %c0_7 = arith.constant 0 : index
    %c0_8 = arith.constant 0 : index
    %12 = vector.load %arg4[%c0_6, %c0_7, %c0_8] : memref<2x128x128xbf16, #tpu.memory_space<vmem>>, vector<1x128x128xbf16>
    %13 = vector.shape_cast %12 : vector<1x128x128xbf16> to vector<128x128xbf16>
    %cst_9 = arith.constant dense<0.000000e+00> : vector<8x128xf32>
    %14 = tpu.matmul %11, %13, %cst_9 {dimension_numbers = #tpu.dot_dimension_numbers<[1], [0], [0], [1], [0, 0, 1, 1], [], []>} : vector<8x128xbf16>, vector<128x128xbf16>, vector<8x128xf32> -> vector<8x128xf32>
    %c0_10 = arith.constant 0 : index
    %c0_11 = arith.constant 0 : index
    %c0_12 = arith.constant 0 : index
    %15 = vector.load %arg5[%c0_10, %c0_11, %c0_12] : memref<2x1x128xf32, #tpu.memory_space<vmem>>, vector<1x1x128xf32>
    %16 = vector.shape_cast %15 : vector<1x1x128xf32> to vector<1x128xf32>
    %17 = vector.broadcast %16 : vector<1x128xf32> to vector<8x128xf32>
    %18 = arith.addf %14, %17 : vector<8x128xf32>
    %cst_13 = arith.constant 0.000000e+00 : f32
    %19 = vector.broadcast %cst_13 : f32 to vector<8x128xf32>
    %20 = arith.maximumf %18, %19 : vector<8x128xf32>
    %21 = arith.truncf %20 : vector<8x128xf32> to vector<8x128xbf16>
    %c1 = arith.constant 1 : index
    %c0_14 = arith.constant 0 : index
    %c0_15 = arith.constant 0 : index
    %22 = vector.load %arg4[%c1, %c0_14, %c0_15] : memref<2x128x128xbf16, #tpu.memory_space<vmem>>, vector<1x128x128xbf16>
    %23 = vector.shape_cast %22 : vector<1x128x128xbf16> to vector<128x128xbf16>
    %cst_16 = arith.constant dense<0.000000e+00> : vector<8x128xf32>
    %24 = tpu.matmul %21, %23, %cst_16 {dimension_numbers = #tpu.dot_dimension_numbers<[1], [0], [0], [1], [0, 0, 1, 1], [], []>} : vector<8x128xbf16>, vector<128x128xbf16>, vector<8x128xf32> -> vector<8x128xf32>
    %c1_17 = arith.constant 1 : index
    %c0_18 = arith.constant 0 : index
    %c0_19 = arith.constant 0 : index
    %25 = vector.load %arg5[%c1_17, %c0_18, %c0_19] : memref<2x1x128xf32, #tpu.memory_space<vmem>>, vector<1x1x128xf32>
    %26 = vector.shape_cast %25 : vector<1x1x128xf32> to vector<1x128xf32>
    %27 = vector.broadcast %26 : vector<1x128xf32> to vector<8x128xf32>
    %28 = arith.addf %24, %27 : vector<8x128xf32>
    %cst_20 = arith.constant 0.000000e+00 : f32
    %29 = vector.broadcast %cst_20 : f32 to vector<8x128xf32>
    %30 = arith.maximumf %28, %29 : vector<8x128xf32>
    %31 = arith.truncf %30 : vector<8x128xf32> to vector<8x128xbf16>
    %c0_21 = arith.constant 0 : index
    %c0_22 = arith.constant 0 : index
    %32 = vector.load %arg6[%c0_21, %c0_22] : memref<128x1xbf16, #tpu.memory_space<vmem>>, vector<128x1xbf16>
    %cst_23 = arith.constant dense<0.000000e+00> : vector<8x1xf32>
    %33 = tpu.matmul %31, %32, %cst_23 {dimension_numbers = #tpu.dot_dimension_numbers<[1], [0], [0], [1], [0, 0, 1, 1], [], []>} : vector<8x128xbf16>, vector<128x1xbf16>, vector<8x1xf32> -> vector<8x1xf32>
    %c0_24 = arith.constant 0 : index
    %c0_25 = arith.constant 0 : index
    %34 = vector.load %arg7[%c0_24, %c0_25] : memref<1x1xf32, #tpu.memory_space<vmem>>, vector<1x1xf32>
    %35 = vector.broadcast %34 : vector<1x1xf32> to vector<8x1xf32>
    %36 = arith.addf %33, %35 : vector<8x1xf32>
    %37 = arith.negf %36 : vector<8x1xf32>
    %38 = math.exp %37 : vector<8x1xf32>
    %cst_26 = arith.constant 1.000000e+00 : f32
    %39 = vector.broadcast %cst_26 : f32 to vector<8x1xf32>
    %40 = arith.addf %39, %38 : vector<8x1xf32>
    %41 = arith.divf %39, %40 : vector<8x1xf32>
    %c0_27 = arith.constant 0 : index
    %c0_28 = arith.constant 0 : index
    %42 = vector.load %arg8[%c0_27, %c0_28] : memref<8x1xf32, #tpu.memory_space<vmem>>, vector<8x1xf32>
    tpu.vector_store %arg8[%c0_27, %c0_28], %41 {strides = array<i32>} : memref<8x1xf32, #tpu.memory_space<vmem>>, vector<8x1xf32>,
    return
  }
  func.func @transform_0(%arg0: i32) -> (i32, i32) {
    %c0_i32 = arith.constant 0 : i32
    %c0_i32_0 = arith.constant 0 : i32
    return %arg0, %c0_i32 : i32, i32
  }
  func.func @transform_1(%arg0: i32) -> (i32, i32) {
    %c0_i32 = arith.constant 0 : i32
    %c0_i32_0 = arith.constant 0 : i32
    %c0_i32_1 = arith.constant 0 : i32
    return %c0_i32, %c0_i32_0 : i32, i32
  }
  func.func @transform_2(%arg0: i32) -> (i32, i32) {
    %c0_i32 = arith.constant 0 : i32
    %c0_i32_0 = arith.constant 0 : i32
    %c0_i32_1 = arith.constant 0 : i32
    return %c0_i32, %c0_i32_0 : i32, i32
  }
  func.func @transform_3(%arg0: i32) -> (i32, i32, i32) {
    %c0_i32 = arith.constant 0 : i32
    %c0_i32_0 = arith.constant 0 : i32
    %c0_i32_1 = arith.constant 0 : i32
    %c0_i32_2 = arith.constant 0 : i32
    return %c0_i32, %c0_i32_0, %c0_i32_1 : i32, i32, i32
  }
  func.func @transform_4(%arg0: i32) -> (i32, i32, i32) {
    %c0_i32 = arith.constant 0 : i32
    %c0_i32_0 = arith.constant 0 : i32
    %c0_i32_1 = arith.constant 0 : i32
    %c0_i32_2 = arith.constant 0 : i32
    return %c0_i32, %c0_i32_0, %c0_i32_1 : i32, i32, i32
  }
  func.func @transform_5(%arg0: i32) -> (i32, i32) {
    %c0_i32 = arith.constant 0 : i32
    %c0_i32_0 = arith.constant 0 : i32
    %c0_i32_1 = arith.constant 0 : i32
    return %c0_i32, %c0_i32_0 : i32, i32
  }
  func.func @transform_6(%arg0: i32) -> (i32, i32) {
    %c0_i32 = arith.constant 0 : i32
    %c0_i32_0 = arith.constant 0 : i32
    %c0_i32_1 = arith.constant 0 : i32
    return %c0_i32, %c0_i32_0 : i32, i32
  }
  func.func @transform_7(%arg0: i32) -> (i32, i32) {
    %c0_i32 = arith.constant 0 : i32
    %c0_i32_0 = arith.constant 0 : i32
    return %arg0, %c0_i32 : i32, i32
  }
}

</mosaic_0001>

<bundles_post_ra>
// kernel: tpu_custom_call.1
= control target key start
LH: loop header
LB: loop body
LE: loop exit
PB: predicated region body
PF: predicated region fallthrough
CT: control target
= control target key end

     0   :  { %s961_s0 = inlined_call_operand.vmem [shape: bf16[8,128], index: 0, kind: input, shape index: {}]   ;;  %s962_s1 = inlined_call_operand.vmem [shape: bf16[128,128], index: 1, kind: input, shape index: {}]   ;;  %s963_s2 = inlined_call_operand.vmem [shape: f32[1,128], index: 2, kind: input, shape index: {}]   ;;  %s964_s3 = inlined_call_operand.hbm [shape: bf16[2,128,128], index: 3, kind: input, shape index: {}]   ;;  %s965_s4 = inlined_call_operand.vmem [shape: f32[2,1,128], index: 4, kind: input, shape index: {}]   ;;  %s966_s5 = inlined_call_operand.vmem [shape: bf16[128,1], index: 5, kind: input, shape index: {}]   ;;  %s967_s6 = inlined_call_operand.<no memory space> [shape: f32[1,1], index: 6, kind: input, shape index: {}]   ;;  %s968_s7 = inlined_call_operand.hbm [shape: f32[1,8], index: 7, kind: output, shape index: {}]  }
   0x1   :  { %v12_v0 = vstv %s967_s6 }
   0x2   :  { %13 = vst [vmem:[#allocation2] sm:$0x1] %v12_v0 }
   0x3   :  { %14 = vsyncpa [#allocation4], 0 }
   0x4   :  { %15 = vsyncpa [#allocation5], 0  ;;  %s787_s26 = smov [#allocation3]   ;;  %s739_s30 = scalar_lea.hbm %s964_s3, 2048 }
   0x5   :  { %s27_s27 = sshll.u32 %s787_s26, 4  ;;  %p740_p0 = scmp.ne.s32.totalorder %s964_s3, %s739_s30  ;;  %s28_s27 = int_to_ptr.vmem [resolvable:$true] %s27_s27 }
   0x6   :  { %p743_p1 = scmp.lt.u32.totalorder %s739_s30, %s964_s3 }
   0x8   :  { %p745_p2 = pnand %p743_p1, %p740_p0 }
   0xa   :  { %748 = shalt.err (!%p745_p2)
}
   0xb   :  { %s749_s6 = scalar_lea.vmem %s28_s27, 2048  ;;  %p754_p4 = scmp.lt.s32.totalorder %s28_s27, %s28_s27 }
   0xc   :  { %p750_p3 = scmp.ne.s32.totalorder %s28_s27, %s749_s6  ;;  %p755_p5 = scmp.lt.s32.totalorder %s749_s6, %s749_s6 }
   0xe   :  { %p756_p6 = por %p755_p5, %p754_p4 }
  0x10   :  { %p757_p7 = pnand %p756_p6, %p750_p3 }
  0x12   :  { %760 = shalt.err (!%p757_p7)
}
  0x13   :  { %s788_s12 = smov 64   ;;  %s789_s13 = smov 4  }
  0x14   :  { %33 = dma.hbm_to_vmem [thread:$0]  %s964_s3, 2048, %s28_s27, [#allocation4], %s788_s12, %s788_s12, %s789_s13  }
  0x15   :  { %783 = dma.done.wait [#allocation4], 2048  }
  0x16   :  { %784 = vsyncadd [#allocation4], 4294965248  ;;  %v790_v1 = vmov 0.0   ;;  %vm791_vm0 = vmmov 0   ;;  %v699_v2 = vld [vmem:[%s962_s1] sm:$0xff]   ;;  %v700_v3 = vld [vmem:[%s962_s1 + $0x8] sm:$0xff]  }
  0x17   :  { %611 = vmatprep.subr.bf16.mxu0 %v790_v1  ;;  %627 = vmatprep.mubr.msk.bf16.mxu0 %vm791_vm0, %v790_v1  ;;  %v701_v4 = vld [vmem:[%s962_s1 + $0x10] sm:$0xff]   ;;  %v702_v5 = vld [vmem:[%s962_s1 + $0x18] sm:$0xff]   ;;  %v703_v6 = vld [vmem:[%s962_s1 + $0x20] sm:$0xff]   ;;  %v792_v62 = vmov 0   ;;  %vm519_vm1 = vcmask 57344  }
  0x18   :  { %631 = vmatprep.subr.bf16.mxu1 %v790_v1  ;;  %647 = vmatprep.mubr.msk.bf16.mxu1 %vm791_vm0, %v790_v1  ;;  %v704_v7 = vld [vmem:[%s962_s1 + $0x28] sm:$0xff]   ;;  %v705_v8 = vld [vmem:[%s962_s1 + $0x30] sm:$0xff]   ;;  %v706_v9 = vld [vmem:[%s962_s1 + $0x38] sm:$0xff]  }
  0x19   :  { %612 = vmatpush3.bf16.msra.mxu0 %v699_v2  ;;  %v44_v10 = vld [vmem:[%s961_s0] sm:$0xf]  ;;  %v708_v12 = vld [vmem:[#allocation3 + $0x8] sm:$0xff]   ;;  %v709_v13 = vld [vmem:[#allocation3 + $0x10] sm:$0xff]   ;;  %698 = vset.pattern.permute.xlu0 %v792_v62 }
  0x1a   :  { %613 = vmatprep.subr.bf16.mxu0 %v790_v1  ;;  %v707_v11 = vld [vmem:[#allocation3] sm:$0xff]   ;;  %v710_v14 = vld [vmem:[#allocation3 + $0x18] sm:$0xff]   ;;  %v712_v16 = vld [vmem:[#allocation3 + $0x28] sm:$0xff]  }
  0x1b   :  { %632 = vmatpush3.bf16.msra.mxu1 %v707_v11  ;;  %v711_v15 = vld [vmem:[#allocation3 + $0x20] sm:$0xff]   ;;  %v713_v17 = vld [vmem:[#allocation3 + $0x30] sm:$0xff]   ;;  %v714_v18 = vld [vmem:[#allocation3 + $0x38] sm:$0xff]  }
  0x1c   :  { %633 = vmatprep.subr.bf16.mxu1 %v790_v1  ;;  %v715_v19 = vld [vmem:[#allocation3 + $0x40] sm:$0xff]   ;;  %v716_v20 = vld [vmem:[#allocation3 + $0x48] sm:$0xff]   ;;  %v717_v21 = vld [vmem:[#allocation3 + $0x50] sm:$0xff]  }
  0x1d   :  { %614 = vmatpush3.bf16.msra.mxu0 %v700_v3  ;;  %v718_v22 = vld [vmem:[#allocation3 + $0x58] sm:$0xff]   ;;  %v719_v23 = vld [vmem:[#allocation3 + $0x60] sm:$0xff]   ;;  %v720_v24 = vld [vmem:[#allocation3 + $0x68] sm:$0xff]  }
  0x1e   :  { %615 = vmatprep.subr.bf16.mxu0 %v790_v1  ;;  %v536_v25 = vld [vmem:[%s963_s2] ss:$0 sm:$0xff]  ;;  %v721_v36 = vld [vmem:[#allocation3 + $0x70] sm:$0xff]   ;;  %v724_v39 = vld [vmem:[%s966_s5 + $0x8] sm:$0xff]  }
  0x1f   :  { %634 = vmatpush3.bf16.msra.mxu1 %v708_v12  ;;  %v722_v37 = vld [vmem:[#allocation3 + $0x78] sm:$0xff]   ;;  %v725_v40 = vld [vmem:[%s966_s5 + $0x10] sm:$0xff]   ;;  %v728_v43 = vld [vmem:[%s966_s5 + $0x28] sm:$0xff]  }
  0x20   :  { %635 = vmatprep.subr.bf16.mxu1 %v790_v1  ;;  %v723_v38 = vld [vmem:[%s966_s5] sm:$0xff]   ;;  %v726_v41 = vld [vmem:[%s966_s5 + $0x18] sm:$0xff]   ;;  %v729_v52 = vld [vmem:[%s966_s5 + $0x30] sm:$0xff]  }
  0x21   :  { %616 = vmatpush3.bf16.msra.mxu0 %v701_v4  ;;  %v727_v42 = vld [vmem:[%s966_s5 + $0x20] sm:$0xff]   ;;  %v730_v53 = vld [vmem:[%s966_s5 + $0x38] sm:$0xff]  }
  0x22   :  { %617 = vmatprep.subr.bf16.mxu0 %v790_v1  ;;  %v546_v44 = vld [vmem:[%s965_s4] ss:$0 sm:$0xff]  ;;  %v556_v54 = vld [vmem:[%s965_s4 + $0x1] ss:$0 sm:$0xff]  ;;  %s793_s4 = smov [#allocation6]  }
  0x23   :  { %636 = vmatpush3.bf16.msra.mxu1 %v709_v13  ;;  %v565_v63 = vld [vmem:[#allocation2] ss:$0 sm:$0xff]  ;;  %s527_s5 = sshll.u32 %s793_s4, 4  ;;  %s528_s5 = int_to_ptr.vmem [resolvable:$true] %s527_s5 }
  0x24   :  { %637 = vmatprep.subr.bf16.mxu1 %v790_v1  ;;  %s761_s27 = scalar_lea.vmem %s528_s5, 16  ;;  %s765_s28 = scalar_lea.vmem %s528_s5, 32 }
  0x25   :  { %618 = vmatpush3.bf16.msra.mxu0 %v702_v5  ;;  %p762_p8 = scmp.ne.s32.totalorder %s528_s5, %s761_s27  ;;  %p766_p9 = scmp.lt.s32.totalorder %s528_s5, %s528_s5 }
  0x26   :  { %619 = vmatprep.subr.bf16.mxu0 %v790_v1  ;;  %p767_p10 = scmp.lt.s32.totalorder %s765_s28, %s761_s27 }
  0x27   :  { %638 = vmatpush3.bf16.msra.mxu1 %v710_v14 }
  0x28   :  { %639 = vmatprep.subr.bf16.mxu1 %v790_v1  ;;  %p768_p11 = por %p767_p10, %p766_p9 }
  0x29   :  { %620 = vmatpush3.bf16.msra.mxu0 %v703_v6 }
  0x2a   :  { %621 = vmatprep.subr.bf16.mxu0 %v790_v1  ;;  %p769_p12 = pnand %p768_p11, %p762_p8 }
  0x2b   :  { %640 = vmatpush3.bf16.msra.mxu1 %v711_v15 }
  0x2c   :  { %641 = vmatprep.subr.bf16.mxu1 %v790_v1 }
  0x2d   :  { %622 = vmatpush3.bf16.msra.mxu0 %v704_v7 }
  0x2e   :  { %623 = vmatprep.subr.bf16.mxu0 %v790_v1 }
  0x2f   :  { %642 = vmatpush3.bf16.msra.mxu1 %v712_v16 }
  0x30   :  { %643 = vmatprep.subr.bf16.mxu1 %v790_v1 }
  0x31   :  { %624 = vmatpush3.bf16.msra.mxu0 %v705_v8 }
  0x32   :  { %625 = vmatprep.subr.bf16.mxu0 %v790_v1 }
  0x33   :  { %644 = vmatpush3.bf16.msra.mxu1 %v713_v17 }
  0x34   :  { %645 = vmatprep.subr.bf16.mxu1 %v790_v1 }
  0x35   :  { %626 = vmatpush3.bf16.msra.mxu0 %v706_v9  ;;  %v512_v9 = vlaneseq }
  0x36   :  { %651 = vmatprep.subr.bf16.mxu0 %v790_v1 }
  0x37   :  { %646 = vmatpush3.bf16.msra.mxu1 %v714_v18  ;;  %v515_v11 = vshrl.u32 %v512_v9, 7 }
  0x38   :  { %628 = vmatmul.mubr.bf16.vlgmr.msra.gmra.mrb[0].mxu0 %v44_v10  ;;  %671 = vmatprep.subr.bf16.mxu1 %v790_v1  ;;  %v513_v10 = vand.u32 127, %v512_v9 }
  0x39   :  { %667 = vmatprep.mubr.msk.bf16.mxu0 %vm791_vm0, %v790_v1  ;;  %652 = vmatpush3.bf16.msra.mxu0 %v715_v19 }
  0x3a   :  { %653 = vmatprep.subr.bf16.mxu0 %v790_v1  ;;  %v516_v12 = vsub.s32 %v513_v10, %v515_v11 }
  0x3d   :  { %654 = vmatpush3.bf16.msra.mxu0 %v716_v20 }
  0x3e   :  { %655 = vmatprep.subr.bf16.mxu0 %v790_v1 }
  0x41   :  { %656 = vmatpush3.bf16.msra.mxu0 %v717_v21 }
  0x42   :  { %657 = vmatprep.subr.bf16.mxu0 %v790_v1 }
  0x45   :  { %658 = vmatpush3.bf16.msra.mxu0 %v718_v22 }
  0x46   :  { %659 = vmatprep.subr.bf16.mxu0 %v790_v1 }
  0x49   :  { %660 = vmatpush3.bf16.msra.mxu0 %v719_v23 }
  0x4a   :  { %661 = vmatprep.subr.bf16.mxu0 %v790_v1 }
  0x4d   :  { %662 = vmatpush3.bf16.msra.mxu0 %v720_v24 }
  0x4e   :  { %663 = vmatprep.subr.bf16.mxu0 %v790_v1 }
  0x51   :  { %664 = vmatpush3.bf16.msra.mxu0 %v721_v36 }
  0x52   :  { %665 = vmatprep.subr.bf16.mxu0 %v790_v1 }
  0x55   :  { %666 = vmatpush3.bf16.msra.mxu0 %v722_v37 }
 0x10b   :  { %v150_v26 = vpop.f32.mrb[0].mxu0 }
 0x10c   :  { %v151_v27 = vadd.f32 %v536_v25, %v150_v26  ;;  %v629_v28 = vpop.f32.mrb[1].mxu0 }
 0x10d   :  { %v153_v29 = vpop.f32.mrb[2].mxu0 }
 0x10e   :  { %v545_v30 = vmul.f32 -1.442695, %v151_v27  ;;  %v630_v31 = vpop.f32.mrb[3].mxu0 }
 0x110   :  { %731 = vpow2.f32 %v545_v30 }
 0x11a   :  { %v732_v32 = vpop.eup %731 }
 0x11b   :  { %v159_v33 = vadd.f32 1.0, %v732_v32 }
 0x11d   :  { %733 = vrcp.f32 %v159_v33 }
 0x127   :  { %v734_v34 = vpop.eup %733 }
 0x128   :  { %v162_v35 = vpack.c.bf16 %v734_v34, %v734_v34 }
 0x12a   :  { %648 = vmatmul.mubr.bf16.vlgmr.msra.gmra.mrb[0].mxu1 %v162_v35 }
 0x12b   :  { %687 = vmatprep.mubr.msk.bf16.mxu1 %vm791_vm0, %v790_v1  ;;  %672 = vmatpush3.bf16.msra.mxu1 %v723_v38 }
 0x12c   :  { %673 = vmatprep.subr.bf16.mxu1 %v790_v1 }
 0x12f   :  { %674 = vmatpush3.bf16.msra.mxu1 %v724_v39 }
 0x130   :  { %675 = vmatprep.subr.bf16.mxu1 %v790_v1 }
 0x133   :  { %676 = vmatpush3.bf16.msra.mxu1 %v725_v40 }
 0x134   :  { %677 = vmatprep.subr.bf16.mxu1 %v790_v1 }
 0x137   :  { %678 = vmatpush3.bf16.msra.mxu1 %v726_v41 }
 0x138   :  { %679 = vmatprep.subr.bf16.mxu1 %v790_v1 }
 0x13b   :  { %680 = vmatpush3.bf16.msra.mxu1 %v727_v42 }
 0x13c   :  { %681 = vmatprep.subr.bf16.mxu1 %v790_v1 }
 0x13f   :  { %682 = vmatpush3.bf16.msra.mxu1 %v728_v43 }
 0x140   :  { %683 = vmatprep.subr.bf16.mxu1 %v790_v1 }
 0x143   :  { %684 = vmatpush3.bf16.msra.mxu1 %v729_v52 }
 0x144   :  { %685 = vmatprep.subr.bf16.mxu1 %v790_v1 }
 0x147   :  { %686 = vmatpush3.bf16.msra.mxu1 %v730_v53 }
 0x1fd   :  { %v268_v45 = vpop.f32.mrb[0].mxu1 }
 0x1fe   :  { %v269_v46 = vadd.f32 %v546_v44, %v268_v45  ;;  %v649_v47 = vpop.f32.mrb[1].mxu1 }
 0x1ff   :  { %v271_v48 = vpop.f32.mrb[2].mxu1 }
 0x200   :  { %v274_v49 = vmax.f32 %v269_v46, 0.0  ;;  %v650_v50 = vpop.f32.mrb[3].mxu1 }
 0x202   :  { %v275_v51 = vpack.c.bf16 %v274_v49, %v274_v49 }
 0x204   :  { %668 = vmatmul.mubr.bf16.vlgmr.msra.gmra.mrb[4].mxu0 %v275_v51 }
 0x2d7   :  { %v383_v55 = vpop.f32.mrb[4].mxu0 }
 0x2d8   :  { %v384_v56 = vadd.f32 %v556_v54, %v383_v55  ;;  %v669_v57 = vpop.f32.mrb[5].mxu0 }
 0x2d9   :  { %v386_v58 = vpop.f32.mrb[6].mxu0 }
 0x2da   :  { %v389_v59 = vmax.f32 %v384_v56, 0.0  ;;  %v670_v60 = vpop.f32.mrb[7].mxu0 }
 0x2dc   :  { %v390_v61 = vpack.c.bf16 %v389_v59, %v389_v59 }
 0x2de   :  { %688 = vmatmul.mubr.bf16.vlgmr.msra.gmra.mrb[4].mxu1 %v390_v61 }
 0x3b1   :  { %v496_v0 = vpop.f32.mrb[4].mxu1 }
 0x3b2   :  { %v497_v1 = vadd.f32 %v565_v63, %v496_v0  ;;  %v689_v2 = vpop.f32.mrb[5].mxu1 }
 0x3b3   :  { %v499_v3 = vpop.f32.mrb[6].mxu1 }
 0x3b4   :  { %v574_v4 = vmul.f32 -1.442695, %v497_v1  ;;  %v690_v5 = vpop.f32.mrb[7].mxu1 }
 0x3b6   :  { %735 = vpow2.f32 %v574_v4 }
 0x3c0   :  { %v736_v6 = vpop.eup %735 }
 0x3c1   :  { %v505_v7 = vadd.f32 1.0, %v736_v6 }
 0x3c3   :  { %737 = vrcp.f32 %v505_v7 }
 0x3cd   :  { %v738_v8 = vpop.eup %737 }
 0x3ce   :  { %510 = vperm.xlu0 %698, %v738_v8  }
 0x44d   :  { %v511_v13 = vpop.permute.xlu0 %510 }
 0x44e   :  { %v517_v14 = vrot.slane %v511_v13, %v516_v12 }
 0x450   :  { %520 = vst.msk [vmem:[#allocation6] sm:$0x1] %vm519_vm1, %v517_v14 }
 0x451   :  { %772 = shalt.err (!%p769_p12)
}
 0x452   :  { %s773_s8 = scalar_lea.hbm %s968_s7, 16 }
 0x453   :  { %p774_p13 = scmp.ne.s32.totalorder %s968_s7, %s773_s8  ;;  %p777_p0 = scmp.lt.u32.totalorder %s773_s8, %s968_s7 }
 0x455   :  { %p779_p1 = pnand %p777_p0, %p774_p13 }
 0x457   :  { %782 = shalt.err (!%p779_p1)
}
 0x458   :  { %530 = dma.vmem_to_hbm [thread:$0]  %s528_s5, 16, %s968_s7, [#allocation5]  }
 0x459   :  { %785 = dma.done.wait [#allocation5], 16  }
 0x45a   :  { %786 = vsyncadd [#allocation5], 4294967280 }
 0x45b   :  { %534 = vsyncpa [#allocation4], 1 }
 0x45c   :  { %535 = vsyncpa [#allocation5], 1 }

// kernel: tpu_custom_call.1
= control target key start
LH: loop header
LB: loop body
LE: loop exit
PB: predicated region body
PF: predicated region fallthrough
CT: control target
= control target key end

     0   :  { %s901_s0 = inlined_call_operand.vmem [shape: bf16[8,128], index: 0, kind: input, shape index: {}]   ;;  %s902_s1 = inlined_call_operand.vmem [shape: bf16[128,128], index: 1, kind: input, shape index: {}]   ;;  %s903_s2 = inlined_call_operand.vmem [shape: f32[1,128], index: 2, kind: input, shape index: {}]   ;;  %s904_s3 = inlined_call_operand.hbm [shape: bf16[2,128,128], index: 3, kind: input, shape index: {}]   ;;  %s905_s4 = inlined_call_operand.vmem [shape: f32[2,1,128], index: 4, kind: input, shape index: {}]   ;;  %s906_s5 = inlined_call_operand.vmem [shape: bf16[128,1], index: 5, kind: input, shape index: {}]   ;;  %s907_s6 = inlined_call_operand.<no memory space> [shape: f32[1,1], index: 6, kind: input, shape index: {}]   ;;  %s908_s7 = inlined_call_operand.vmem [shape: f32[8,1], index: 7, kind: output, shape index: {}]  }
   0x1   :  { %v12_v0 = vstv %s907_s6 }
   0x2   :  { %13 = vst [vmem:[#allocation2] sm:$0x1] %v12_v0 }
   0x3   :  { %14 = vsyncpa [#allocation4], 0  ;;  %s738_s26 = smov [#allocation3]   ;;  %s714_s30 = scalar_lea.hbm %s904_s3, 2048 }
   0x4   :  { %s26_s27 = sshll.u32 %s738_s26, 4  ;;  %p715_p0 = scmp.ne.s32.totalorder %s904_s3, %s714_s30  ;;  %s27_s27 = int_to_ptr.vmem [resolvable:$true] %s26_s27 }
   0x5   :  { %p718_p1 = scmp.lt.u32.totalorder %s714_s30, %s904_s3 }
   0x7   :  { %p720_p2 = pnand %p718_p1, %p715_p0 }
   0x9   :  { %723 = shalt.err (!%p720_p2)
}
   0xa   :  { %s724_s6 = scalar_lea.vmem %s27_s27, 2048  ;;  %p729_p4 = scmp.lt.s32.totalorder %s27_s27, %s27_s27 }
   0xb   :  { %p725_p3 = scmp.ne.s32.totalorder %s27_s27, %s724_s6  ;;  %p730_p5 = scmp.lt.s32.totalorder %s724_s6, %s724_s6 }
   0xd   :  { %p731_p6 = por %p730_p5, %p729_p4 }
   0xf   :  { %p732_p7 = pnand %p731_p6, %p725_p3 }
  0x11   :  { %735 = shalt.err (!%p732_p7)
}
  0x12   :  { %s739_s12 = smov 64   ;;  %s740_s13 = smov 4  }
  0x13   :  { %32 = dma.hbm_to_vmem [thread:$0]  %s904_s3, 2048, %s27_s27, [#allocation4], %s739_s12, %s739_s12, %s740_s13  }
  0x14   :  { %736 = dma.done.wait [#allocation4], 2048  }
  0x15   :  { %737 = vsyncadd [#allocation4], 4294965248  ;;  %v741_v1 = vmov 0.0   ;;  %vm742_vm0 = vmmov 0   ;;  %v674_v2 = vld [vmem:[%s902_s1] sm:$0xff]   ;;  %v675_v3 = vld [vmem:[%s902_s1 + $0x8] sm:$0xff]  }
  0x16   :  { %589 = vmatprep.subr.bf16.mxu0 %v741_v1  ;;  %605 = vmatprep.mubr.msk.bf16.mxu0 %vm742_vm0, %v741_v1  ;;  %v676_v4 = vld [vmem:[%s902_s1 + $0x10] sm:$0xff]   ;;  %v677_v5 = vld [vmem:[%s902_s1 + $0x18] sm:$0xff]   ;;  %v678_v6 = vld [vmem:[%s902_s1 + $0x20] sm:$0xff]   ;;  %vm507_vm1 = vcmask 7168  }
  0x17   :  { %609 = vmatprep.subr.bf16.mxu1 %v741_v1  ;;  %625 = vmatprep.mubr.msk.bf16.mxu1 %vm742_vm0, %v741_v1  ;;  %v679_v7 = vld [vmem:[%s902_s1 + $0x28] sm:$0xff]   ;;  %v680_v8 = vld [vmem:[%s902_s1 + $0x30] sm:$0xff]   ;;  %v681_v9 = vld [vmem:[%s902_s1 + $0x38] sm:$0xff]  }
  0x18   :  { %590 = vmatpush3.bf16.msra.mxu0 %v674_v2  ;;  %v43_v10 = vld [vmem:[%s901_s0] sm:$0xf]  ;;  %v683_v12 = vld [vmem:[#allocation3 + $0x8] sm:$0xff]   ;;  %v684_v13 = vld [vmem:[#allocation3 + $0x10] sm:$0xff]  }
  0x19   :  { %591 = vmatprep.subr.bf16.mxu0 %v741_v1  ;;  %v682_v11 = vld [vmem:[#allocation3] sm:$0xff]   ;;  %v685_v14 = vld [vmem:[#allocation3 + $0x18] sm:$0xff]   ;;  %v687_v16 = vld [vmem:[#allocation3 + $0x28] sm:$0xff]  }
  0x1a   :  { %610 = vmatpush3.bf16.msra.mxu1 %v682_v11  ;;  %v686_v15 = vld [vmem:[#allocation3 + $0x20] sm:$0xff]   ;;  %v688_v17 = vld [vmem:[#allocation3 + $0x30] sm:$0xff]   ;;  %v689_v18 = vld [vmem:[#allocation3 + $0x38] sm:$0xff]  }
  0x1b   :  { %611 = vmatprep.subr.bf16.mxu1 %v741_v1  ;;  %v690_v19 = vld [vmem:[#allocation3 + $0x40] sm:$0xff]   ;;  %v691_v20 = vld [vmem:[#allocation3 + $0x48] sm:$0xff]   ;;  %v692_v21 = vld [vmem:[#allocation3 + $0x50] sm:$0xff]  }
  0x1c   :  { %592 = vmatpush3.bf16.msra.mxu0 %v675_v3  ;;  %v693_v22 = vld [vmem:[#allocation3 + $0x58] sm:$0xff]   ;;  %v694_v23 = vld [vmem:[#allocation3 + $0x60] sm:$0xff]   ;;  %v695_v24 = vld [vmem:[#allocation3 + $0x68] sm:$0xff]  }
  0x1d   :  { %593 = vmatprep.subr.bf16.mxu0 %v741_v1  ;;  %v514_v25 = vld [vmem:[%s903_s2] ss:$0 sm:$0xff]  ;;  %v696_v36 = vld [vmem:[#allocation3 + $0x70] sm:$0xff]   ;;  %v699_v39 = vld [vmem:[%s906_s5 + $0x8] sm:$0xff]  }
  0x1e   :  { %612 = vmatpush3.bf16.msra.mxu1 %v683_v12  ;;  %v697_v37 = vld [vmem:[#allocation3 + $0x78] sm:$0xff]   ;;  %v700_v40 = vld [vmem:[%s906_s5 + $0x10] sm:$0xff]   ;;  %v703_v43 = vld [vmem:[%s906_s5 + $0x28] sm:$0xff]  }
  0x1f   :  { %613 = vmatprep.subr.bf16.mxu1 %v741_v1  ;;  %v698_v38 = vld [vmem:[%s906_s5] sm:$0xff]   ;;  %v701_v41 = vld [vmem:[%s906_s5 + $0x18] sm:$0xff]   ;;  %v704_v52 = vld [vmem:[%s906_s5 + $0x30] sm:$0xff]  }
  0x20   :  { %594 = vmatpush3.bf16.msra.mxu0 %v676_v4  ;;  %v702_v42 = vld [vmem:[%s906_s5 + $0x20] sm:$0xff]   ;;  %v705_v53 = vld [vmem:[%s906_s5 + $0x38] sm:$0xff]  }
  0x21   :  { %595 = vmatprep.subr.bf16.mxu0 %v741_v1  ;;  %v524_v44 = vld [vmem:[%s905_s4] ss:$0 sm:$0xff]  ;;  %v534_v54 = vld [vmem:[%s905_s4 + $0x1] ss:$0 sm:$0xff] }
  0x22   :  { %614 = vmatpush3.bf16.msra.mxu1 %v684_v13  ;;  %v543_v62 = vld [vmem:[#allocation2] ss:$0 sm:$0xff] }
  0x23   :  { %615 = vmatprep.subr.bf16.mxu1 %v741_v1 }
  0x24   :  { %596 = vmatpush3.bf16.msra.mxu0 %v677_v5 }
  0x25   :  { %597 = vmatprep.subr.bf16.mxu0 %v741_v1 }
  0x26   :  { %616 = vmatpush3.bf16.msra.mxu1 %v685_v14 }
  0x27   :  { %617 = vmatprep.subr.bf16.mxu1 %v741_v1 }
  0x28   :  { %598 = vmatpush3.bf16.msra.mxu0 %v678_v6 }
  0x29   :  { %599 = vmatprep.subr.bf16.mxu0 %v741_v1 }
  0x2a   :  { %618 = vmatpush3.bf16.msra.mxu1 %v686_v15 }
  0x2b   :  { %619 = vmatprep.subr.bf16.mxu1 %v741_v1 }
  0x2c   :  { %600 = vmatpush3.bf16.msra.mxu0 %v679_v7 }
  0x2d   :  { %601 = vmatprep.subr.bf16.mxu0 %v741_v1 }
  0x2e   :  { %620 = vmatpush3.bf16.msra.mxu1 %v687_v16 }
  0x2f   :  { %621 = vmatprep.subr.bf16.mxu1 %v741_v1 }
  0x30   :  { %602 = vmatpush3.bf16.msra.mxu0 %v680_v8 }
  0x31   :  { %603 = vmatprep.subr.bf16.mxu0 %v741_v1 }
  0x32   :  { %622 = vmatpush3.bf16.msra.mxu1 %v688_v17 }
  0x33   :  { %623 = vmatprep.subr.bf16.mxu1 %v741_v1 }
  0x34   :  { %604 = vmatpush3.bf16.msra.mxu0 %v681_v9 }
  0x35   :  { %629 = vmatprep.subr.bf16.mxu0 %v741_v1 }
  0x36   :  { %624 = vmatpush3.bf16.msra.mxu1 %v689_v18 }
  0x37   :  { %606 = vmatmul.mubr.bf16.vlgmr.msra.gmra.mrb[0].mxu0 %v43_v10  ;;  %649 = vmatprep.subr.bf16.mxu1 %v741_v1 }
  0x38   :  { %645 = vmatprep.mubr.msk.bf16.mxu0 %vm742_vm0, %v741_v1  ;;  %630 = vmatpush3.bf16.msra.mxu0 %v690_v19 }
  0x39   :  { %631 = vmatprep.subr.bf16.mxu0 %v741_v1 }
  0x3c   :  { %632 = vmatpush3.bf16.msra.mxu0 %v691_v20 }
  0x3d   :  { %633 = vmatprep.subr.bf16.mxu0 %v741_v1 }
  0x40   :  { %634 = vmatpush3.bf16.msra.mxu0 %v692_v21 }
  0x41   :  { %635 = vmatprep.subr.bf16.mxu0 %v741_v1 }
  0x44   :  { %636 = vmatpush3.bf16.msra.mxu0 %v693_v22 }
  0x45   :  { %637 = vmatprep.subr.bf16.mxu0 %v741_v1 }
  0x48   :  { %638 = vmatpush3.bf16.msra.mxu0 %v694_v23 }
  0x49   :  { %639 = vmatprep.subr.bf16.mxu0 %v741_v1 }
  0x4c   :  { %640 = vmatpush3.bf16.msra.mxu0 %v695_v24 }
  0x4d   :  { %641 = vmatprep.subr.bf16.mxu0 %v741_v1 }
  0x50   :  { %642 = vmatpush3.bf16.msra.mxu0 %v696_v36 }
  0x51   :  { %643 = vmatprep.subr.bf16.mxu0 %v741_v1 }
  0x54   :  { %644 = vmatpush3.bf16.msra.mxu0 %v697_v37 }
 0x10a   :  { %v149_v26 = vpop.f32.mrb[0].mxu0 }
 0x10b   :  { %v150_v27 = vadd.f32 %v514_v25, %v149_v26  ;;  %v607_v28 = vpop.f32.mrb[1].mxu0 }
 0x10c   :  { %v152_v29 = vpop.f32.mrb[2].mxu0 }
 0x10d   :  { %v523_v30 = vmul.f32 -1.442695, %v150_v27  ;;  %v608_v31 = vpop.f32.mrb[3].mxu0 }
 0x10f   :  { %706 = vpow2.f32 %v523_v30 }
 0x119   :  { %v707_v32 = vpop.eup %706 }
 0x11a   :  { %v158_v33 = vadd.f32 1.0, %v707_v32 }
 0x11c   :  { %708 = vrcp.f32 %v158_v33 }
 0x126   :  { %v709_v34 = vpop.eup %708 }
 0x127   :  { %v161_v35 = vpack.c.bf16 %v709_v34, %v709_v34 }
 0x129   :  { %626 = vmatmul.mubr.bf16.vlgmr.msra.gmra.mrb[0].mxu1 %v161_v35 }
 0x12a   :  { %665 = vmatprep.mubr.msk.bf16.mxu1 %vm742_vm0, %v741_v1  ;;  %650 = vmatpush3.bf16.msra.mxu1 %v698_v38 }
 0x12b   :  { %651 = vmatprep.subr.bf16.mxu1 %v741_v1 }
 0x12e   :  { %652 = vmatpush3.bf16.msra.mxu1 %v699_v39 }
 0x12f   :  { %653 = vmatprep.subr.bf16.mxu1 %v741_v1 }
 0x132   :  { %654 = vmatpush3.bf16.msra.mxu1 %v700_v40 }
 0x133   :  { %655 = vmatprep.subr.bf16.mxu1 %v741_v1 }
 0x136   :  { %656 = vmatpush3.bf16.msra.mxu1 %v701_v41 }
 0x137   :  { %657 = vmatprep.subr.bf16.mxu1 %v741_v1 }
 0x13a   :  { %658 = vmatpush3.bf16.msra.mxu1 %v702_v42 }
 0x13b   :  { %659 = vmatprep.subr.bf16.mxu1 %v741_v1 }
 0x13e   :  { %660 = vmatpush3.bf16.msra.mxu1 %v703_v43 }
 0x13f   :  { %661 = vmatprep.subr.bf16.mxu1 %v741_v1 }
 0x142   :  { %662 = vmatpush3.bf16.msra.mxu1 %v704_v52 }
 0x143   :  { %663 = vmatprep.subr.bf16.mxu1 %v741_v1 }
 0x146   :  { %664 = vmatpush3.bf16.msra.mxu1 %v705_v53 }
 0x1fc   :  { %v267_v45 = vpop.f32.mrb[0].mxu1 }
 0x1fd   :  { %v268_v46 = vadd.f32 %v524_v44, %v267_v45  ;;  %v627_v47 = vpop.f32.mrb[1].mxu1 }
 0x1fe   :  { %v270_v48 = vpop.f32.mrb[2].mxu1 }
 0x1ff   :  { %v273_v49 = vmax.f32 %v268_v46, 0.0  ;;  %v628_v50 = vpop.f32.mrb[3].mxu1 }
 0x201   :  { %v274_v51 = vpack.c.bf16 %v273_v49, %v273_v49 }
 0x203   :  { %646 = vmatmul.mubr.bf16.vlgmr.msra.gmra.mrb[4].mxu0 %v274_v51 }
 0x2d6   :  { %v382_v55 = vpop.f32.mrb[4].mxu0 }
 0x2d7   :  { %v383_v56 = vadd.f32 %v534_v54, %v382_v55  ;;  %v647_v57 = vpop.f32.mrb[5].mxu0 }
 0x2d8   :  { %v385_v58 = vpop.f32.mrb[6].mxu0 }
 0x2d9   :  { %v388_v59 = vmax.f32 %v383_v56, 0.0  ;;  %v648_v60 = vpop.f32.mrb[7].mxu0 }
 0x2db   :  { %v389_v61 = vpack.c.bf16 %v388_v59, %v388_v59 }
 0x2dd   :  { %666 = vmatmul.mubr.bf16.vlgmr.msra.gmra.mrb[4].mxu1 %v389_v61 }
 0x3b0   :  { %v495_v63 = vpop.f32.mrb[4].mxu1 }
 0x3b1   :  { %v496_v0 = vadd.f32 %v543_v62, %v495_v63  ;;  %v667_v1 = vpop.f32.mrb[5].mxu1 }
 0x3b2   :  { %v498_v2 = vpop.f32.mrb[6].mxu1 }
 0x3b3   :  { %v552_v3 = vmul.f32 -1.442695, %v496_v0  ;;  %v668_v4 = vpop.f32.mrb[7].mxu1 }
 0x3b5   :  { %710 = vpow2.f32 %v552_v3 }
 0x3bf   :  { %v711_v5 = vpop.eup %710 }
 0x3c0   :  { %v504_v6 = vadd.f32 1.0, %v711_v5 }
 0x3c2   :  { %712 = vrcp.f32 %v504_v6 }
 0x3cc   :  { %v713_v7 = vpop.eup %712 }
 0x3cd   :  { %508 = vst.msk [vmem:[%s908_s7] sm:$0xff] %vm507_vm1, %v713_v7 }
 0x3ce   :  { %513 = vsyncpa [#allocation4], 1 }

</bundles_post_ra>
